<compile_context>
chip_gen: v7x
topology: tpu7x:2x2x1
jax: 0.10.0
libtpu: 0.0.40
codegen_flags: <defaults>
</compile_context>

<pallas_src>
import functools

import jax
import jax.numpy as jnp
from jax.experimental import pallas as pl
from jax.experimental.pallas import tpu as pltpu

BN_EPS = 1e-5
# Conservative resident+slab budget that fits every generation (v7x has 64 MiB VMEM).
VMEM_BUDGET = 44 * 1024 * 1024


def _gin_kernel(adj_ref, x_hbm, pool_ref, wa_ref, wb_ref, vecs_ref, wl_ref, bl_ref,
                out_ref,
                feat_ref, featb_ref, ssum_ref, ssq_ref, x_sem,
                *, n_nodes, out_valid):
    l = pl.program_id(0)            # layer index (0 or 1)
    i = pl.program_id(1)            # node-row tile index
    nt = pl.num_programs(1)
    tm = adj_ref.shape[0]

    # ---- one-time init: DMA the (padded) input features into the resident bufs
    @pl.when(jnp.logical_and(l == 0, i == 0))
    def _():
        cp = pltpu.make_async_copy(x_hbm, feat_ref, x_sem)
        cp.start()
        cp.wait()
        featb_ref[...] = feat_ref[...].astype(jnp.bfloat16)

    # ---- per-layer init: reset BatchNorm statistic accumulators
    @pl.when(i == 0)
    def _():
        ssum_ref[...] = jnp.zeros_like(ssum_ref)
        ssq_ref[...] = jnp.zeros_like(ssq_ref)

    # ---- per-tile work: neighbor aggregation + MLP for this block of node rows
    r0 = pl.multiple_of(i * tm, tm)
    # int8 adjacency slab -> bf16 (VPU cast, hidden under the DMA), then MXU matmul.
    adj_bf = adj_ref[...].astype(jnp.float32).astype(jnp.bfloat16)
    agg = jnp.dot(adj_bf, featb_ref[...],
                  preferred_element_type=jnp.float32)            # (tm, Hp)
    pre = feat_ref[pl.ds(r0, tm), :] + agg                       # (1+eps)*x, eps=0

    vecs = vecs_ref[0]                                           # (4, Hp): ba, bb, gamma, beta
    h = jnp.dot(pre, wa_ref[0], preferred_element_type=jnp.float32) + vecs[0:1]
    h = jnp.maximum(h, 0.0)
    h = jnp.dot(h, wb_ref[0], preferred_element_type=jnp.float32) + vecs[1:2]

    # Write the pre-BN output in place: these feat rows are dead after the
    # self-term read above (aggregation always reads the bf16 mirror).
    feat_ref[pl.ds(r0, tm), :] = h

    # BN column statistics: fold rows into an (8, Hp) partial with VPU adds.
    hp = h.shape[1]
    h3 = h.reshape(tm // 8, 8, hp)
    ssum_ref[...] += jnp.sum(h3, axis=0)
    ssq_ref[...] += jnp.sum(h3 * h3, axis=0)

    # ---- end of layer: BatchNorm (training batch stats, biased var) + outer ReLU
    @pl.when(i == nt - 1)
    def _():
        inv_n = jnp.float32(1.0 / n_nodes)
        mu = jnp.sum(ssum_ref[...], axis=0, keepdims=True) * inv_n
        ex2 = jnp.sum(ssq_ref[...], axis=0, keepdims=True) * inv_n
        var = jnp.maximum(ex2 - mu * mu, 0.0)       # clamp E[x^2]-E[x]^2 cancellation
        gamma, beta = vecs[2:3], vecs[3:4]
        scale = jax.lax.rsqrt(var + BN_EPS) * gamma
        hn = jnp.maximum((feat_ref[...] - mu) * scale + beta, 0.0)
        feat_ref[...] = hn
        featb_ref[...] = hn.astype(jnp.bfloat16)

    # ---- after the second layer: global_add_pool + Linear + log_softmax
    @pl.when(jnp.logical_and(l == 1, i == nt - 1))
    def _():
        # bf16 epilogue with f32 accumulate (pool and final weight are bf16).
        g = jnp.dot(pool_ref[...], featb_ref[...],
                    preferred_element_type=jnp.float32)          # (G, Hp)
        logits = jnp.dot(g.astype(jnp.bfloat16), wl_ref[...],
                         preferred_element_type=jnp.float32) + bl_ref[...]
        n_graphs, c_pad = out_ref.shape
        col = jax.lax.broadcasted_iota(jnp.int32, (n_graphs, c_pad), 1)
        logits = jnp.where(col < out_valid, logits, jnp.float32(-1e30))
        m = jnp.max(logits, axis=1, keepdims=True)
        z = logits - m
        lse = jnp.log(jnp.sum(jnp.exp(z), axis=1, keepdims=True))
        out_ref[...] = z - lse


def _pad2(a, rows, cols):
    return jnp.pad(a, ((0, rows - a.shape[0]), (0, cols - a.shape[1])))


def _choose_row_tile(n, resident_bytes):
    """Largest row tile whose double-buffered int8 adj slab fits the VMEM budget."""
    avail = max(VMEM_BUDGET - resident_bytes, 0)
    max_rows = avail // (2 * n)          # 2 buffers x row_tile x n x 1 byte
    if max_rows >= n or n < 8:
        return n                         # whole adjacency resident: grid = (2, 1)
    candidates = [d for d in range(32, n, 32) if n % d == 0 and d <= max_rows]
    if candidates:
        return max(candidates)
    return n                             # fall back (pathological n); vmem limit covers it


def gin_forward(x, edge_index, batch, params, num_graphs, *, row_tile=None):
    """x: [N, Cin] f32, edge_index: [2, E] i32, batch: [N] i32."""
    n, cin = x.shape
    hidden = params["w1b"].shape[0]
    cout = params["wl"].shape[1]
    assert n % 8 == 0, "node count must be a multiple of 8"
    # TODO(synk): ragged N (masked BN stats / padded nodes) not handled.

    # Lane-dense padded widths.
    hp = ((max(hidden, cin) + 127) // 128) * 128     # padded hidden width
    c_pad = ((cout + 127) // 128) * 128              # padded output width

    # ---- host-side glue --------------------------------------------------
    # Dense adjacency built in int8 (half the HBM bytes of bf16); cast in-kernel.
    # TODO(synk): edge multiplicities > 127 overflow int8 (multigraphs).
    src, tgt = edge_index[0], edge_index[1]
    adj = jnp.zeros((n, n), jnp.int8).at[tgt, src].add(1)
    # Pooling matrix emitted directly as [G, N] in bf16 (0/1 entries are exact).
    pool = (batch[None, :] == jnp.arange(num_graphs, dtype=batch.dtype)[:, None]
            ).astype(jnp.bfloat16)
    # Zero-pad input features / weights so both layers share one lane-dense shape.
    x_pad = _pad2(x.astype(jnp.float32), n, hp)
    wa = jnp.stack([_pad2(params["w1a"], hp, hp), _pad2(params["w2a"], hp, hp)])  # (2,Hp,Hp)
    wb = jnp.stack([_pad2(params["w1b"], hp, hp), _pad2(params["w2b"], hp, hp)])  # (2,Hp,Hp)

    def _vec(v):
        return jnp.pad(v, (0, hp - v.shape[0]))
    vecs = jnp.stack([
        jnp.stack([_vec(params["b1a"]), _vec(params["b1b"]),
                   _vec(params["g1"]), _vec(params["be1"])]),
        jnp.stack([_vec(params["b2a"]), _vec(params["b2b"]),
                   _vec(params["g2"]), _vec(params["be2"])]),
    ])                                                                            # (2,4,Hp)
    wl = _pad2(params["wl"], hp, c_pad).astype(jnp.bfloat16)
    bl = _pad2(params["bl"].reshape(1, -1), 1, c_pad)

    # ---- VMEM budget -> adjacency row tile & scoped limit ------------------
    resident = (
        n * hp * 4 + n * hp * 2            # feat (f32) + featb (bf16) resident scratch
        + 2 * 8 * hp * 4                   # BN partial accumulators
        + 2 * (2 * hp * hp * 4 + 4 * hp * 4)   # wa/wb/vecs per-layer blocks (double-buffered)
        + 2 * num_graphs * n * 2           # pool (bf16, double-buffered)
        + 2 * (hp * c_pad * 2 + c_pad * 4)     # wl (bf16) + bl
        + 2 * num_graphs * c_pad * 4       # output block
    )
    if row_tile is None:
        row_tile = _choose_row_tile(n, resident)
    assert n % row_tile == 0 and (row_tile == n or row_tile % 32 == 0), \
        "row_tile must divide N and be a multiple of 32 (int8 adjacency) or equal N"
    nt = n // row_tile
    used = resident + 2 * row_tile * n     # + double-buffered int8 adj slab
    vmem_limit = int(min(max(used + (8 << 20), 32 << 20), 56 << 20))

    kernel = functools.partial(_gin_kernel, n_nodes=n, out_valid=cout)
    grid_spec = pltpu.PrefetchScalarGridSpec(
        num_scalar_prefetch=0,
        grid=(2, nt),                                   # (layer, node-row tile)
        in_specs=[
            pl.BlockSpec((row_tile, n), lambda l, i: (i, 0)),        # int8 adj row slab
            pl.BlockSpec(memory_space=pl.ANY),                       # x_pad (HBM, DMA'd once)
            pl.BlockSpec((num_graphs, n), lambda l, i: (0, 0)),      # pool (bf16)
            pl.BlockSpec((1, hp, hp), lambda l, i: (l, 0, 0)),       # wa per layer
            pl.BlockSpec((1, hp, hp), lambda l, i: (l, 0, 0)),       # wb per layer
            pl.BlockSpec((1, 4, hp), lambda l, i: (l, 0, 0)),        # packed bias/gamma/beta
            pl.BlockSpec((hp, c_pad), lambda l, i: (0, 0)),          # final weight (bf16)
            pl.BlockSpec((1, c_pad), lambda l, i: (0, 0)),           # final bias
        ],
        out_specs=pl.BlockSpec((num_graphs, c_pad), lambda l, i: (0, 0)),
        scratch_shapes=[
            pltpu.VMEM((n, hp), jnp.float32),      # feat: layer input -> pre-BN output (in place)
            pltpu.VMEM((n, hp), jnp.bfloat16),     # bf16 mirror fed to the MXU
            pltpu.VMEM((8, hp), jnp.float32),      # BN column-sum partial
            pltpu.VMEM((8, hp), jnp.float32),      # BN column-sum-sq partial
            pltpu.SemaphoreType.DMA(()),           # semaphore for the one-time x DMA
        ],
    )
    out = pl.pallas_call(
        kernel,
        out_shape=jax.ShapeDtypeStruct((num_graphs, c_pad), jnp.float32),
        grid_spec=grid_spec,
        compiler_params=pltpu.CompilerParams(
            dimension_semantics=("arbitrary", "arbitrary"),
            vmem_limit_bytes=vmem_limit),
    )(adj, x_pad, pool, wa, wb, vecs, wl, bl)
    return out[:, :cout]


def _reference(x, edge_index, batch, params, num_graphs):
    """Pure-JAX f32 reference of the GIN forward (training-mode BN)."""
    n = x.shape[0]
    src, tgt = edge_index[0], edge_index[1]
    adj = jnp.zeros((n, n), jnp.float32).at[tgt, src].add(1.0)

    def conv(feat, wa, ba, wb, bb, g, be):
        h = feat + adj @ feat
        h = jnp.maximum(h @ wa + ba, 0.0)
        h = h @ wb + bb
        mu = jnp.mean(h, axis=0, keepdims=True)
        var = jnp.mean((h - mu) ** 2, axis=0, keepdims=True)
        return jnp.maximum((h - mu) / jnp.sqrt(var + BN_EPS) * g + be, 0.0)

    h = conv(x, params["w1a"], params["b1a"], params["w1b"], params["b1b"],
             params["g1"], params["be1"])
    h = conv(h, params["w2a"], params["b2a"], params["w2b"], params["b2b"],
             params["g2"], params["be2"])
    pool = (batch[None, :] == jnp.arange(num_graphs, dtype=batch.dtype)[:, None]
            ).astype(jnp.float32)
    logits = pool @ h @ params["wl"] + params["bl"]
    return jax.nn.log_softmax(logits, axis=1)


def init_params(key, in_channels, hidden_channels, out_channels):
    ks = jax.random.split(key, 5)

    def lin(k, fan_in, fan_out):
        # weight stored already transposed: [in, out]  (PyTorch Linear is [out, in])
        w = jax.random.normal(k, (fan_in, fan_out), jnp.float32) * 0.1
        b = jnp.full((fan_out,), 0.01, jnp.float32)
        return w, b

    w1a, b1a = lin(ks[0], in_channels, hidden_channels)
    w1b, b1b = lin(ks[1], hidden_channels, hidden_channels)
    w2a, b2a = lin(ks[2], hidden_channels, hidden_channels)
    w2b, b2b = lin(ks[3], hidden_channels, hidden_channels)
    wl, bl = lin(ks[4], hidden_channels, out_channels)
    ones = jnp.ones((hidden_channels,), jnp.float32)
    zeros = jnp.zeros((hidden_channels,), jnp.float32)
    return dict(w1a=w1a, b1a=b1a, w1b=w1b, b1b=b1b, g1=ones, be1=zeros,
                w2a=w2a, b2a=b2a, w2b=w2b, b2b=b2b, g2=ones, be2=zeros,
                wl=wl, bl=bl)


if __name__ == "__main__":
    in_channels, hidden_channels, out_channels = 4, 32, 4
    num_nodes, num_graphs, num_edges = 64, 2, 160

    key = jax.random.PRNGKey(0)
    kx, ke1, ke2, kp = jax.random.split(key, 4)

    x = jax.random.normal(kx, (num_nodes, in_channels), jnp.float32)
    half = num_nodes // 2
    # two graphs: first half of the nodes belong to graph 0, second half to graph 1
    batch = jnp.concatenate([jnp.zeros(half, jnp.int32), jnp.ones(half, jnp.int32)])
    # random edges kept within each graph
    e_half = num_edges // 2
    src0 = jax.random.randint(ke1, (e_half,), 0, half)
    tgt0 = jax.random.randint(ke2, (e_half,), 0, half)
    src1 = jax.random.randint(ke1, (e_half,), half, num_nodes)
    tgt1 = jax.random.randint(ke2, (e_half,), half, num_nodes)
    edge_index = jnp.stack([jnp.concatenate([src0, src1]),
                            jnp.concatenate([tgt0, tgt1])]).astype(jnp.int32)

    params = init_params(kp, in_channels, hidden_channels, out_channels)

    # Small graph: the tile chooser takes the whole adjacency in one slab (grid=(2,1)).
    out = gin_forward(x, edge_index, batch, params, num_graphs)
    out = jax.block_until_ready(out)

    assert out.shape == (num_graphs, out_channels)
    assert bool(jnp.all(jnp.isfinite(out)))
    # rows of log_softmax must exp-sum to 1
    assert bool(jnp.allclose(jnp.sum(jnp.exp(out), axis=1), 1.0, atol=1e-5))
    # compare against the pure-JAX f32 reference (loose tol: bf16 aggregation path)
    ref = _reference(x, edge_index, batch, params, num_graphs)
    assert bool(jnp.allclose(out, ref, atol=0.1, rtol=0.1)), \
        f"max abs diff {float(jnp.max(jnp.abs(out - ref)))}"
    print("KERNEL_OK")
</pallas_src>

<mosaic_0001>
module attributes {stable_mosaic.version = 11 : i64} {
  func.func @_gin_kernel(%arg0: i32, %arg1: i32, %arg2: memref<64x64xi8, #tpu.memory_space<vmem>>, %arg3: memref<64x128xf32, #tpu.memory_space<any>>, %arg4: memref<2x64xbf16, #tpu.memory_space<vmem>>, %arg5: memref<1x128x128xf32, #tpu.memory_space<vmem>>, %arg6: memref<1x128x128xf32, #tpu.memory_space<vmem>>, %arg7: memref<1x4x128xf32, #tpu.memory_space<vmem>>, %arg8: memref<128x128xbf16, #tpu.memory_space<vmem>>, %arg9: memref<1x128xf32, #tpu.memory_space<vmem>>, %arg10: memref<2x128xf32, #tpu.memory_space<vmem>>, %arg11: memref<64x128xf32, #tpu.memory_space<vmem>>, %arg12: memref<64x128xbf16, #tpu.memory_space<vmem>>, %arg13: memref<8x128xf32, #tpu.memory_space<vmem>>, %arg14: memref<8x128xf32, #tpu.memory_space<vmem>>, %arg15: memref<!tpu.dma_semaphore, #tpu.memory_space<semaphore_mem>>) attributes {dimension_semantics = [#tpu.dimension_semantics<arbitrary>, #tpu.dimension_semantics<arbitrary>], iteration_bounds = array<i64: 2, 1>, scalar_prefetch = 0 : i64, scratch_operands = 5 : i64, tpu.core_type = #tpu.core_type<tc>, window_params = [{transform_indices = @transform_0, window_bounds = array<i64: 64, 64>}, {}, {pipeline_mode = #tpu.pipeline_mode<synchronous>, transform_indices = @transform_2, window_bounds = array<i64: 2, 64>}, {transform_indices = @transform_3, window_bounds = array<i64: 1, 128, 128>}, {transform_indices = @transform_4, window_bounds = array<i64: 1, 128, 128>}, {transform_indices = @transform_5, window_bounds = array<i64: 1, 4, 128>}, {pipeline_mode = #tpu.pipeline_mode<synchronous>, transform_indices = @transform_6, window_bounds = array<i64: 128, 128>}, {pipeline_mode = #tpu.pipeline_mode<synchronous>, transform_indices = @transform_7, window_bounds = array<i64: 1, 128>}, {pipeline_mode = #tpu.pipeline_mode<synchronous>, transform_indices = @transform_8, window_bounds = array<i64: 2, 128>}]} {
    %c0_i32 = arith.constant 0 : i32
    %0 = arith.cmpi eq, %arg0, %c0_i32 : i32
    %c0_i32_0 = arith.constant 0 : i32
    %1 = arith.cmpi eq, %arg1, %c0_i32_0 : i32
    %2 = arith.andi %0, %1 : i1
    %3 = arith.extui %2 : i1 to i32
    %c0_i32_1 = arith.constant 0 : i32
    %4 = arith.cmpi ne, %3, %c0_i32_1 : i32
    scf.if %4 {
      tpu.enqueue_dma source(%arg3 : memref<64x128xf32, #tpu.memory_space<any>>) target(%arg11 : memref<64x128xf32, #tpu.memory_space<vmem>>) target_semaphore(%arg15 : memref<!tpu.dma_semaphore, #tpu.memory_space<semaphore_mem>>)
      tpu.wait_dma2 semaphore(%arg15 : memref<!tpu.dma_semaphore, #tpu.memory_space<semaphore_mem>>) src(%arg3 : memref<64x128xf32, #tpu.memory_space<any>>) dst(%arg11 : memref<64x128xf32, #tpu.memory_space<vmem>>)
      %c0_35 = arith.constant 0 : index
      %c0_36 = arith.constant 0 : index
      %54 = vector.load %arg11[%c0_35, %c0_36] : memref<64x128xf32, #tpu.memory_space<vmem>>, vector<64x128xf32>
      %55 = arith.truncf %54 : vector<64x128xf32> to vector<64x128xbf16>
      %c0_37 = arith.constant 0 : index
      %c0_38 = arith.constant 0 : index
      %56 = vector.load %arg12[%c0_37, %c0_38] : memref<64x128xbf16, #tpu.memory_space<vmem>>, vector<64x128xbf16>
      tpu.vector_store %arg12[%c0_37, %c0_38], %55 {strides = array<i32>} : memref<64x128xbf16, #tpu.memory_space<vmem>>, vector<64x128xbf16>,
    } else {
    }
    %c0_i32_2 = arith.constant 0 : i32
    %5 = arith.cmpi eq, %arg1, %c0_i32_2 : i32
    %6 = arith.extui %5 : i1 to i32
    %c0_i32_3 = arith.constant 0 : i32
    %7 = arith.cmpi ne, %6, %c0_i32_3 : i32
    scf.if %7 {
      %cst_35 = arith.constant 0.000000e+00 : f32
      %54 = vector.broadcast %cst_35 : f32 to vector<8x128xf32>
      %c0_36 = arith.constant 0 : index
      %c0_37 = arith.constant 0 : index
      %55 = vector.load %arg13[%c0_36, %c0_37] : memref<8x128xf32, #tpu.memory_space<vmem>>, vector<8x128xf32>
      tpu.vector_store %arg13[%c0_36, %c0_37], %54 {strides = array<i32>} : memref<8x128xf32, #tpu.memory_space<vmem>>, vector<8x128xf32>,
      %cst_38 = arith.constant 0.000000e+00 : f32
      %56 = vector.broadcast %cst_38 : f32 to vector<8x128xf32>
      %c0_39 = arith.constant 0 : index
      %c0_40 = arith.constant 0 : index
      %57 = vector.load %arg14[%c0_39, %c0_40] : memref<8x128xf32, #tpu.memory_space<vmem>>, vector<8x128xf32>
      tpu.vector_store %arg14[%c0_39, %c0_40], %56 {strides = array<i32>} : memref<8x128xf32, #tpu.memory_space<vmem>>, vector<8x128xf32>,
    } else {
    }
    %c64_i32 = arith.constant 64 : i32
    %8 = arith.muli %arg1, %c64_i32 : i32
    %9 = tpu.assume_multiple %8, 64 : i32
    %c0 = arith.constant 0 : index
    %c0_4 = arith.constant 0 : index
    %10 = vector.load %arg2[%c0, %c0_4] : memref<64x64xi8, #tpu.memory_space<vmem>>, vector<64x64xi8>
    %11 = arith.sitofp %10 : vector<64x64xi8> to vector<64x64xf32>
    %12 = arith.truncf %11 : vector<64x64xf32> to vector<64x64xbf16>
    %c0_5 = arith.constant 0 : index
    %c0_6 = arith.constant 0 : index
    %13 = vector.load %arg12[%c0_5, %c0_6] : memref<64x128xbf16, #tpu.memory_space<vmem>>, vector<64x128xbf16>
    %cst = arith.constant dense<0.000000e+00> : vector<64x128xf32>
    %14 = tpu.matmul %12, %13, %cst {dimension_numbers = #tpu.dot_dimension_numbers<[1], [0], [0], [1], [0, 0, 1, 1], [], []>} : vector<64x64xbf16>, vector<64x128xbf16>, vector<64x128xf32> -> vector<64x128xf32>
    %15 = arith.index_cast %9 : i32 to index
    %c0_7 = arith.constant 0 : index
    %16 = vector.load %arg11[%15, %c0_7] : memref<64x128xf32, #tpu.memory_space<vmem>>, vector<64x128xf32>
    %17 = arith.addf %16, %14 : vector<64x128xf32>
    %c0_8 = arith.constant 0 : index
    %c0_9 = arith.constant 0 : index
    %c0_10 = arith.constant 0 : index
    %18 = vector.load %arg7[%c0_8, %c0_9, %c0_10] : memref<1x4x128xf32, #tpu.memory_space<vmem>>, vector<1x4x128xf32>
    %19 = vector.shape_cast %18 : vector<1x4x128xf32> to vector<4x128xf32>
    %c0_11 = arith.constant 0 : index
    %c0_12 = arith.constant 0 : index
    %c0_13 = arith.constant 0 : index
    %20 = vector.load %arg5[%c0_11, %c0_12, %c0_13] : memref<1x128x128xf32, #tpu.memory_space<vmem>>, vector<1x128x128xf32>
    %21 = vector.shape_cast %20 : vector<1x128x128xf32> to vector<128x128xf32>
    %cst_14 = arith.constant dense<0.000000e+00> : vector<64x128xf32>
    %22 = tpu.matmul %17, %21, %cst_14 {dimension_numbers = #tpu.dot_dimension_numbers<[1], [0], [0], [1], [0, 0, 1, 1], [], []>} : vector<64x128xf32>, vector<128x128xf32>, vector<64x128xf32> -> vector<64x128xf32>
    %23 = vector.extract_strided_slice %19 {offsets = [0, 0], sizes = [1, 128], strides = [1, 1]} : vector<4x128xf32> to vector<1x128xf32>
    %24 = vector.broadcast %23 : vector<1x128xf32> to vector<64x128xf32>
    %25 = arith.addf %22, %24 : vector<64x128xf32>
    %cst_15 = arith.constant 0.000000e+00 : f32
    %26 = vector.broadcast %cst_15 : f32 to vector<64x128xf32>
    %27 = arith.maximumf %25, %26 : vector<64x128xf32>
    %c0_16 = arith.constant 0 : index
    %c0_17 = arith.constant 0 : index
    %c0_18 = arith.constant 0 : index
    %28 = vector.load %arg6[%c0_16, %c0_17, %c0_18] : memref<1x128x128xf32, #tpu.memory_space<vmem>>, vector<1x128x128xf32>
    %29 = vector.shape_cast %28 : vector<1x128x128xf32> to vector<128x128xf32>
    %cst_19 = arith.constant dense<0.000000e+00> : vector<64x128xf32>
    %30 = tpu.matmul %27, %29, %cst_19 {dimension_numbers = #tpu.dot_dimension_numbers<[1], [0], [0], [1], [0, 0, 1, 1], [], []>} : vector<64x128xf32>, vector<128x128xf32>, vector<64x128xf32> -> vector<64x128xf32>
    %31 = vector.extract_strided_slice %19 {offsets = [1, 0], sizes = [1, 128], strides = [1, 1]} : vector<4x128xf32> to vector<1x128xf32>
    %32 = vector.broadcast %31 : vector<1x128xf32> to vector<64x128xf32>
    %33 = arith.addf %30, %32 : vector<64x128xf32>
    %34 = arith.index_cast %9 : i32 to index
    %c0_20 = arith.constant 0 : index
    %35 = vector.load %arg11[%34, %c0_20] : memref<64x128xf32, #tpu.memory_space<vmem>>, vector<64x128xf32>
    tpu.vector_store %arg11[%34, %c0_20], %33 {strides = array<i32>} : memref<64x128xf32, #tpu.memory_space<vmem>>, vector<64x128xf32>,
    %36 = vector.shape_cast %33 : vector<64x128xf32> to vector<8x8x128xf32>
    %c0_21 = arith.constant 0 : index
    %c0_22 = arith.constant 0 : index
    %37 = vector.load %arg13[%c0_21, %c0_22] : memref<8x128xf32, #tpu.memory_space<vmem>>, vector<8x128xf32>
    %cst_23 = arith.constant dense<0.000000e+00> : vector<8x128xf32>
    %38 = vector.multi_reduction <add>, %36, %cst_23 [0] : vector<8x8x128xf32> to vector<8x128xf32>
    %39 = arith.addf %37, %38 : vector<8x128xf32>
    %c0_24 = arith.constant 0 : index
    %c0_25 = arith.constant 0 : index
    %40 = vector.load %arg13[%c0_24, %c0_25] : memref<8x128xf32, #tpu.memory_space<vmem>>, vector<8x128xf32>
    tpu.vector_store %arg13[%c0_24, %c0_25], %39 {strides = array<i32>} : memref<8x128xf32, #tpu.memory_space<vmem>>, vector<8x128xf32>,
    %c0_26 = arith.constant 0 : index
    %c0_27 = arith.constant 0 : index
    %41 = vector.load %arg14[%c0_26, %c0_27] : memref<8x128xf32, #tpu.memory_space<vmem>>, vector<8x128xf32>
    %42 = arith.mulf %36, %36 : vector<8x8x128xf32>
    %cst_28 = arith.constant dense<0.000000e+00> : vector<8x128xf32>
    %43 = vector.multi_reduction <add>, %42, %cst_28 [0] : vector<8x8x128xf32> to vector<8x128xf32>
    %44 = arith.addf %41, %43 : vector<8x128xf32>
    %c0_29 = arith.constant 0 : index
    %c0_30 = arith.constant 0 : index
    %45 = vector.load %arg14[%c0_29, %c0_30] : memref<8x128xf32, #tpu.memory_space<vmem>>, vector<8x128xf32>
    tpu.vector_store %arg14[%c0_29, %c0_30], %44 {strides = array<i32>} : memref<8x128xf32, #tpu.memory_space<vmem>>, vector<8x128xf32>,
    %c0_i32_31 = arith.constant 0 : i32
    %46 = arith.cmpi eq, %arg1, %c0_i32_31 : i32
    %47 = arith.extui %46 : i1 to i32
    %c0_i32_32 = arith.constant 0 : i32
    %48 = arith.cmpi ne, %47, %c0_i32_32 : i32
    scf.if %48 {
      %c0_35 = arith.constant 0 : index
      %c0_36 = arith.constant 0 : index
      %54 = vector.load %arg13[%c0_35, %c0_36] : memref<8x128xf32, #tpu.memory_space<vmem>>, vector<8x128xf32>
      %cst_37 = arith.constant dense<0.000000e+00> : vector<128xf32>
      %55 = vector.multi_reduction <add>, %54, %cst_37 [0] : vector<8x128xf32> to vector<128xf32>
      %56 = vector.shape_cast %55 : vector<128xf32> to vector<1x128xf32>
      %cst_38 = arith.constant 1.562500e-02 : f32
      %57 = vector.broadcast %cst_38 : f32 to vector<1x128xf32>
      %58 = arith.mulf %56, %57 : vector<1x128xf32>
      %c0_39 = arith.constant 0 : index
      %c0_40 = arith.constant 0 : index
      %59 = vector.load %arg14[%c0_39, %c0_40] : memref<8x128xf32, #tpu.memory_space<vmem>>, vector<8x128xf32>
      %cst_41 = arith.constant dense<0.000000e+00> : vector<128xf32>
      %60 = vector.multi_reduction <add>, %59, %cst_41 [0] : vector<8x128xf32> to vector<128xf32>
      %61 = vector.shape_cast %60 : vector<128xf32> to vector<1x128xf32>
      %cst_42 = arith.constant 1.562500e-02 : f32
      %62 = vector.broadcast %cst_42 : f32 to vector<1x128xf32>
      %63 = arith.mulf %61, %62 : vector<1x128xf32>
      %64 = arith.mulf %58, %58 : vector<1x128xf32>
      %65 = arith.subf %63, %64 : vector<1x128xf32>
      %cst_43 = arith.constant 0.000000e+00 : f32
      %66 = vector.broadcast %cst_43 : f32 to vector<1x128xf32>
      %67 = arith.maximumf %65, %66 : vector<1x128xf32>
      %68 = vector.extract_strided_slice %19 {offsets = [2, 0], sizes = [1, 128], strides = [1, 1]} : vector<4x128xf32> to vector<1x128xf32>
      %69 = vector.extract_strided_slice %19 {offsets = [3, 0], sizes = [1, 128], strides = [1, 1]} : vector<4x128xf32> to vector<1x128xf32>
      %cst_44 = arith.constant 9.99999974E-6 : f32
      %70 = vector.broadcast %cst_44 : f32 to vector<1x128xf32>
      %71 = arith.addf %67, %70 : vector<1x128xf32>
      %72 = math.rsqrt %71 : vector<1x128xf32>
      %73 = arith.mulf %72, %68 : vector<1x128xf32>
      %c0_45 = arith.constant 0 : index
      %c0_46 = arith.constant 0 : index
      %74 = vector.load %arg11[%c0_45, %c0_46] : memref<64x128xf32, #tpu.memory_space<vmem>>, vector<64x128xf32>
      %75 = vector.broadcast %58 : vector<1x128xf32> to vector<64x128xf32>
      %76 = arith.subf %74, %75 : vector<64x128xf32>
      %77 = vector.broadcast %73 : vector<1x128xf32> to vector<64x128xf32>
      %78 = arith.mulf %76, %77 : vector<64x128xf32>
      %79 = vector.broadcast %69 : vector<1x128xf32> to vector<64x128xf32>
      %80 = arith.addf %78, %79 : vector<64x128xf32>
      %cst_47 = arith.constant 0.000000e+00 : f32
      %81 = vector.broadcast %cst_47 : f32 to vector<64x128xf32>
      %82 = arith.maximumf %80, %81 : vector<64x128xf32>
      %c0_48 = arith.constant 0 : index
      %c0_49 = arith.constant 0 : index
      %83 = vector.load %arg11[%c0_48, %c0_49] : memref<64x128xf32, #tpu.memory_space<vmem>>, vector<64x128xf32>
      tpu.vector_store %arg11[%c0_48, %c0_49], %82 {strides = array<i32>} : memref<64x128xf32, #tpu.memory_space<vmem>>, vector<64x128xf32>,
      %84 = arith.truncf %82 : vector<64x128xf32> to vector<64x128xbf16>
      %c0_50 = arith.constant 0 : index
      %c0_51 = arith.constant 0 : index
      %85 = vector.load %arg12[%c0_50, %c0_51] : memref<64x128xbf16, #tpu.memory_space<vmem>>, vector<64x128xbf16>
      tpu.vector_store %arg12[%c0_50, %c0_51], %84 {strides = array<i32>} : memref<64x128xbf16, #tpu.memory_space<vmem>>, vector<64x128xbf16>,
    } else {
    }
    %c1_i32 = arith.constant 1 : i32
    %49 = arith.cmpi eq, %arg0, %c1_i32 : i32
    %c0_i32_33 = arith.constant 0 : i32
    %50 = arith.cmpi eq, %arg1, %c0_i32_33 : i32
    %51 = arith.andi %49, %50 : i1
    %52 = arith.extui %51 : i1 to i32
    %c0_i32_34 = arith.constant 0 : i32
    %53 = arith.cmpi ne, %52, %c0_i32_34 : i32
    scf.if %53 {
      %c0_35 = arith.constant 0 : index
      %c0_36 = arith.constant 0 : index
      %54 = vector.load %arg4[%c0_35, %c0_36] : memref<2x64xbf16, #tpu.memory_space<vmem>>, vector<2x64xbf16>
      %c0_37 = arith.constant 0 : index
      %c0_38 = arith.constant 0 : index
      %55 = vector.load %arg12[%c0_37, %c0_38] : memref<64x128xbf16, #tpu.memory_space<vmem>>, vector<64x128xbf16>
      %cst_39 = arith.constant dense<0.000000e+00> : vector<2x128xf32>
      %56 = tpu.matmul %54, %55, %cst_39 {dimension_numbers = #tpu.dot_dimension_numbers<[1], [0], [0], [1], [0, 0, 1, 1], [], []>} : vector<2x64xbf16>, vector<64x128xbf16>, vector<2x128xf32> -> vector<2x128xf32>
      %57 = arith.truncf %56 : vector<2x128xf32> to vector<2x128xbf16>
      %c0_40 = arith.constant 0 : index
      %c0_41 = arith.constant 0 : index
      %58 = vector.load %arg8[%c0_40, %c0_41] : memref<128x128xbf16, #tpu.memory_space<vmem>>, vector<128x128xbf16>
      %cst_42 = arith.constant dense<0.000000e+00> : vector<2x128xf32>
      %59 = tpu.matmul %57, %58, %cst_42 {dimension_numbers = #tpu.dot_dimension_numbers<[1], [0], [0], [1], [0, 0, 1, 1], [], []>} : vector<2x128xbf16>, vector<128x128xbf16>, vector<2x128xf32> -> vector<2x128xf32>
      %c0_43 = arith.constant 0 : index
      %c0_44 = arith.constant 0 : index
      %60 = vector.load %arg9[%c0_43, %c0_44] : memref<1x128xf32, #tpu.memory_space<vmem>>, vector<1x128xf32>
      %61 = vector.broadcast %60 : vector<1x128xf32> to vector<2x128xf32>
      %62 = arith.addf %59, %61 : vector<2x128xf32>
      %63 = tpu.iota {dimensions = array<i32: 1>} : vector<2x128xi32>
      %c4_i32 = arith.constant 4 : i32
      %64 = vector.broadcast %c4_i32 : i32 to vector<2x128xi32>
      %65 = arith.cmpi slt, %63, %64 : vector<2x128xi32>
      %cst_45 = arith.constant -1.000000e+30 : f32
      %66 = vector.broadcast %cst_45 : f32 to vector<2x128xf32>
      %67 = arith.select %65, %62, %66 : vector<2x128xi1>, vector<2x128xf32>
      %cst_46 = arith.constant dense<0xFF800000> : vector<2xf32>
      %68 = vector.multi_reduction <maximumf>, %67, %cst_46 [1] : vector<2x128xf32> to vector<2xf32>
      %69 = vector.shape_cast %68 : vector<2xf32> to vector<2x1xf32>
      %70 = vector.broadcast %69 : vector<2x1xf32> to vector<2x128xf32>
      %71 = arith.subf %67, %70 : vector<2x128xf32>
      %72 = math.exp %71 : vector<2x128xf32>
      %cst_47 = arith.constant dense<0.000000e+00> : vector<2xf32>
      %73 = vector.multi_reduction <add>, %72, %cst_47 [1] : vector<2x128xf32> to vector<2xf32>
      %74 = vector.shape_cast %73 : vector<2xf32> to vector<2x1xf32>
      %75 = math.log %74 : vector<2x1xf32>
      %76 = vector.broadcast %75 : vector<2x1xf32> to vector<2x128xf32>
      %77 = arith.subf %71, %76 : vector<2x128xf32>
      %c0_48 = arith.constant 0 : index
      %c0_49 = arith.constant 0 : index
      %78 = vector.load %arg10[%c0_48, %c0_49] : memref<2x128xf32, #tpu.memory_space<vmem>>, vector<2x128xf32>
      tpu.vector_store %arg10[%c0_48, %c0_49], %77 {strides = array<i32>} : memref<2x128xf32, #tpu.memory_space<vmem>>, vector<2x128xf32>,
    } else {
    }
    return
  }
  func.func @transform_0(%arg0: i32, %arg1: i32) -> (i32, i32) {
    %c0_i32 = arith.constant 0 : i32
    %c0_i32_0 = arith.constant 0 : i32
    return %arg1, %c0_i32 : i32, i32
  }
  func.func @transform_2(%arg0: i32, %arg1: i32) -> (i32, i32) {
    %c0_i32 = arith.constant 0 : i32
    %c0_i32_0 = arith.constant 0 : i32
    %c0_i32_1 = arith.constant 0 : i32
    return %c0_i32, %c0_i32_0 : i32, i32
  }
  func.func @transform_3(%arg0: i32, %arg1: i32) -> (i32, i32, i32) {
    %c0_i32 = arith.constant 0 : i32
    %c0_i32_0 = arith.constant 0 : i32
    %c0_i32_1 = arith.constant 0 : i32
    return %arg0, %c0_i32, %c0_i32_0 : i32, i32, i32
  }
  func.func @transform_4(%arg0: i32, %arg1: i32) -> (i32, i32, i32) {
    %c0_i32 = arith.constant 0 : i32
    %c0_i32_0 = arith.constant 0 : i32
    %c0_i32_1 = arith.constant 0 : i32
    return %arg0, %c0_i32, %c0_i32_0 : i32, i32, i32
  }
  func.func @transform_5(%arg0: i32, %arg1: i32) -> (i32, i32, i32) {
    %c0_i32 = arith.constant 0 : i32
    %c0_i32_0 = arith.constant 0 : i32
    %c0_i32_1 = arith.constant 0 : i32
    return %arg0, %c0_i32, %c0_i32_0 : i32, i32, i32
  }
  func.func @transform_6(%arg0: i32, %arg1: i32) -> (i32, i32) {
    %c0_i32 = arith.constant 0 : i32
    %c0_i32_0 = arith.constant 0 : i32
    %c0_i32_1 = arith.constant 0 : i32
    return %c0_i32, %c0_i32_0 : i32, i32
  }
  func.func @transform_7(%arg0: i32, %arg1: i32) -> (i32, i32) {
    %c0_i32 = arith.constant 0 : i32
    %c0_i32_0 = arith.constant 0 : i32
    %c0_i32_1 = arith.constant 0 : i32
    return %c0_i32, %c0_i32_0 : i32, i32
  }
  func.func @transform_8(%arg0: i32, %arg1: i32) -> (i32, i32) {
    %c0_i32 = arith.constant 0 : i32
    %c0_i32_0 = arith.constant 0 : i32
    %c0_i32_1 = arith.constant 0 : i32
    return %c0_i32, %c0_i32_0 : i32, i32
  }
}

</mosaic_0001>

<bundles_post_ra>
// kernel: tpu_custom_call.1
= control target key start
LH: loop header
LB: loop body
LE: loop exit
PB: predicated region body
PF: predicated region fallthrough
CT: control target
= control target key end

     0   :  { %s2324_s0 = inlined_call_operand.hbm [shape: s8[64,64], index: 0, kind: input, shape index: {}]   ;;  %s2325_s1 = inlined_call_operand.hbm [shape: f32[64,128], index: 1, kind: input, shape index: {}]   ;;  %s2326_s2 = inlined_call_operand.vmem [shape: bf16[2,64], index: 2, kind: input, shape index: {}]   ;;  %s2327_s3 = inlined_call_operand.hbm [shape: f32[2,128,128], index: 3, kind: input, shape index: {}]   ;;  %s2328_s4 = inlined_call_operand.hbm [shape: f32[2,128,128], index: 4, kind: input, shape index: {}]   ;;  %s2329_s5 = inlined_call_operand.vmem [shape: f32[2,4,128], index: 5, kind: input, shape index: {}]   ;;  %s2330_s6 = inlined_call_operand.hbm [shape: bf16[128,128], index: 6, kind: input, shape index: {}]   ;;  %s2331_s7 = inlined_call_operand.vmem [shape: f32[1,128], index: 7, kind: input, shape index: {}]   ;;  %s2332_s8 = inlined_call_operand.hbm [shape: f32[2,128], index: 8, kind: output, shape index: {}]  }
   0x1   :  { %2347 = sst [smem:[#allocation30_spill]] %s2327_s3 }
   0x2   :  { %13 = vsyncpa [#allocation8], 0 }
   0x3   :  { %14 = vsyncpa [#allocation11], 0 }
   0x4   :  { %16 = vsyncpa [#allocation11 + $0x1], 0 }
   0x5   :  { %17 = vsyncpa [#allocation14], 0 }
   0x6   :  { %18 = vsyncpa [#allocation9], 0  ;;  %s1944_s27 = smov 0   ;;  %s1946_s28 = smov 0  }
   0x7   :  { %s1948_s29 = smov 0   ;;  %s1950_s30 = smov 0  }
   0x8   :  { %s1952_s9 = smov 0   ;;  %s1954_s10 = smov 0  }
   0x9 LB: > { %2348 = sst [smem:[#allocation25_spill]] %s1873_s29  ;;  %s36_s11 = sadd.s32 1, %s1881_s9  ;;  %s1885_s10 = sphi %s1954_s10, %s24_s10   ;;  %s1881_s9 = sphi %s1952_s9, %s2374_s9   ;;  %s1877_s30 = sphi %s1950_s30, %s2373_s30   ;;  %s1873_s29 = sphi %s1948_s29, %s2372_s29   ;;  %s1869_s28 = sphi %s1946_s28, %s2376_s28   ;;  %s1865_s27 = sphi %s1944_s27, %s2375_s27  }
   0xa   : > { %2349 = sst [smem:[#allocation26_spill]] %s1881_s9  ;;  %s90_s12 = sadd.s32 1, %s1873_s29 }
   0xb   : > { %2350 = sst [smem:[#allocation27_spill]] %s1885_s10  ;;  %p38_p0 = scmp.ge.s32.totalorder %s36_s11, 2 }
   0xc   : > { %p97_p1 = scmp.ne.s32.totalorder %s1873_s29, %s1869_s28  ;;  %p98_p2 = scmp.eq.s32.totalorder %s1885_s10, 0 }
   0xd   : > { %s2378_s11 = smov (%p38_p0, %s36_s11), 0  ;;  %p1580_p5 = scmp.lt.s32.totalorder %s1885_s10, 2 }
   0xe   : > { %2351 = sst [smem:[#allocation28_spill]] %s2378_s11  ;;  %p1981_p3 = por %p98_p2, %p97_p1 }
   0xf   : > { %s87_s14 = ssub.s32 %s1881_s9, %s2378_s11  ;;  %s277_s15 = sand.u32 1, %s1885_s10  }
  0x10   : > { %p88_p4 = scmp.eq.s32.totalorder %s87_s14, 0  ;;  %s279_s16 = sand.u32 1, %s1873_s29  }
  0x11   : > { %s1993_s18 = sshll.u32 %s279_s16, 7  ;;  %s1274_s19 = sshll.u32 %s1881_s9, 11 }
  0x12   : > { %s1991_s17 = scalar_select %p88_p4, %s1873_s29, %s90_s12  }
  0x13   : > { %s2354_s3 = sld [smem:[#allocation30_spill]]  ;;  %s281_s23 = scalar_lea.vmem [#allocation10], %s1993_s18 }
  0x14   : > { %2353 = sst [smem:[#allocation29_spill]] %s1991_s17  ;;  %s288_s24 = sshll.u32 %s281_s23, 4  ;;  %s2004_s24 = int_to_ptr.vmem [resolvable:$true] %s288_s24 }
  0x15   : > { %p2008_p6 = pnand %p1580_p5, %p1981_p3  ;;  %s2012_s26 = scalar_lea.sflag [#allocation11], %s277_s15 }
  0x17   : > { %s2355_s25 = scalar_select %p2008_p6, 1, 0 }
  0x18   : > { %p2340_p8 = pneg %p2008_p6 }
  0x19   : > { %s2001_s22 = scalar_lea.hbm %s2354_s3, %s1274_s19  ;;  %s1662_s13 = scalar_lea.hbm %s2354_s3, 4096 }
  0x1a   : > { %s1657_s12 = scalar_lea.hbm %s2001_s22, 2048  ;;  %p1663_p11 = scmp.lt.u32.totalorder %s2001_s22, %s2354_s3 }
  0x1b   : > { %p1658_p7 = scmp.ne.s32.totalorder %s2001_s22, %s1657_s12  ;;  %p1664_p12 = scmp.lt.u32.totalorder %s1662_s13, %s1657_s12 }
  0x1c   : > { %p1666_p0 = scmp.lt.u32.totalorder %s1657_s12, %s2001_s22 }
  0x1d   : > { %p1660_p9 = pnand %p2340_p8, %p1658_p7  ;;  %p1665_p13 = por %p1664_p12, %p1663_p11 }
  0x1f   : > { %p1661_p10 = pneg %p1660_p9  ;;  %p1667_p1 = por %p1666_p0, %p1665_p13 }
  0x21   : > { %p1668_p2 = pnand %p1667_p1, %p1661_p10 }
  0x23   : > { %1671 = shalt.err (!%p1668_p2)
}
  0x24   : > { %s1672_s15 = scalar_lea.vmem %s2004_s24, 2048  ;;  %s1887_s23 = smov [#allocation10]  }
  0x25   : > { %p1673_p3 = scmp.ne.s32.totalorder %s2004_s24, %s1672_s15  ;;  %s1677_s14 = sshll.u32 %s1887_s23, 4  ;;  %s1678_s14 = int_to_ptr.vmem [resolvable:$false] %s1677_s14 }
  0x26   : > { %s1679_s16 = scalar_lea.vmem %s1678_s14, 4096  ;;  %p1680_p7 = scmp.lt.s32.totalorder %s2004_s24, %s1678_s14 }
  0x27   : > { %p1675_p4 = pnand %p1673_p3, %p2340_p8  ;;  %p1681_p9 = scmp.lt.s32.totalorder %s1679_s16, %s1672_s15 }
  0x29   : > { %p1676_p5 = pneg %p1675_p4  ;;  %p1682_p11 = por %p1681_p9, %p1680_p7 }
  0x2b   : > { %p1683_p12 = pnand %p1682_p11, %p1676_p5 }
  0x2d   : > { %1686 = shalt.err (!%p1683_p12)
}
  0x2e   : > { %s2333_s12 = smov 128   ;;  %s2335_s13 = smov 8  }
  0x2f   : > { %1574 = dma.hbm_to_vmem [thread:$0]  (!%p2008_p6), %s2001_s22, 2048, %s2004_s24, %s2012_s26, %s2333_s12, %s2333_s12, %s2335_s13  }
  0x30   : > { %s2048_s15 = scalar_lea.hbm %s2328_s4, %s1274_s19  ;;  %s2051_s23 = sadd.s32 4294967295, %s1885_s10  }
  0x31   : > { %p103_p10 = scmp.ne.s32.totalorder %s1869_s28, %s1865_s27  ;;  %p2339_p13 = scmp.eq.s32.totalorder %s2051_s23, 0 }
  0x32   : > { %p1237_p0 = scmp.ge.s32.totalorder %s1885_s10, 1  ;;  %p229_p1 = scmp.lt.s32.totalorder %s1885_s10, 3 }
  0x33   : > { %p2060_p2 = por %p2339_p13, %p103_p10  ;;  %s1890_s19 = smov [#allocation7]  }
  0x34   : > { %p2064_p3 = pnand %p1237_p0, %p229_p1  ;;  %s244_s24 = sshll.u32 %s1890_s19, 4  ;;  %s245_s24 = int_to_ptr.vmem [resolvable:$true] %s244_s24 }
  0x35   : > { %s2356_s14 = scalar_select %p2060_p2, 1, 0 }
  0x36   : > { %s2357_s22 = scalar_select %p2064_p3, 1, 0 }
  0x37   : > { %s302_s16 = scalar_lea.vmem [#allocation12], %s1993_s18  ;;  %p1564_p4 = pneg %p2064_p3 }
  0x38   : > { %s309_s20 = sshll.u32 %s302_s16, 4  ;;  %s1891_s27 = smov [#allocation13]   ;;  %s2079_s20 = int_to_ptr.vmem [resolvable:$true] %s309_s20 }
  0x39   : > { %s260_s21 = sshll.u32 %s1891_s27, 4  ;;  %p2073_p5 = pnand %p1564_p4, %p2339_p13  ;;  %s2077_s21 = int_to_ptr.vmem [resolvable:$true] %s260_s21 }
  0x3a   : > { %s1687_s18 = scalar_lea.hbm %s2324_s0, 256 }
  0x3b   : > { %p1688_p7 = scmp.ne.s32.totalorder %s2324_s0, %s1687_s18  ;;  %p1689_p9 = pneg %p2073_p5 }
  0x3c   : > { %p1694_p10 = scmp.lt.u32.totalorder %s1687_s18, %s2324_s0 }
  0x3d   : > { %p1690_p11 = pnand %p1689_p9, %p1688_p7 }
  0x3f   : > { %p1691_p12 = pneg %p1690_p11 }
  0x41   : > { %p1696_p0 = pnand %p1694_p10, %p1691_p12 }
  0x43   : > { %1699 = shalt.err (!%p1696_p0)
}
  0x44   : > { %s1700_s9 = scalar_lea.vmem %s245_s24, 256  ;;  %p1708_p8 = scmp.lt.s32.totalorder %s245_s24, %s245_s24 }
  0x45   : > { %p1701_p1 = scmp.ne.s32.totalorder %s245_s24, %s1700_s9  ;;  %p1709_p2 = scmp.lt.s32.totalorder %s1700_s9, %s1700_s9 }
  0x47   : > { %p1703_p4 = pnand %p1701_p1, %p1689_p9  ;;  %p1710_p3 = por %p1709_p2, %p1708_p8 }
  0x49   : > { %p1704_p13 = pneg %p1703_p4 }
  0x4b   : > { %p1711_p6 = pnand %p1710_p3, %p1704_p13 }
  0x4d   : > { %1714 = shalt.err (!%p1711_p6)
}
  0x4e   : > { %s2359_s3 = smov 8   ;;  %s2360_s13 = smov 128  }
  0x4f   : > { %1567 = dma.hbm_to_vmem [thread:$0]  (!%p2073_p5), %s2324_s0, 256, %s245_s24, [#allocation8], %s2360_s13, %s2360_s13, %s2359_s3  }
  0x50   : > { %s1715_s27 = scalar_lea.hbm %s2330_s6, 1024 }
  0x51   : > { %p1716_p8 = scmp.ne.s32.totalorder %s2330_s6, %s1715_s27  ;;  %p1722_p2 = scmp.lt.u32.totalorder %s1715_s27, %s2330_s6 }
  0x53   : > { %p1718_p6 = pnand %p1716_p8, %p1689_p9 }
  0x55   : > { %p1719_p13 = pneg %p1718_p6 }
  0x57   : > { %p1724_p3 = pnand %p1722_p2, %p1719_p13 }
  0x59   : > { %1727 = shalt.err (!%p1724_p3)
}
  0x5a   : > { %s1728_s24 = scalar_lea.vmem %s2077_s21, 1024  ;;  %p1736_p10 = scmp.lt.s32.totalorder %s2077_s21, %s2077_s21 }
  0x5b   : > { %p1729_p7 = scmp.ne.s32.totalorder %s2077_s21, %s1728_s24  ;;  %p1737_p0 = scmp.lt.s32.totalorder %s1728_s24, %s1728_s24 }
  0x5d   : > { %p1731_p11 = pnand %p1729_p7, %p1689_p9  ;;  %p1738_p1 = por %p1737_p0, %p1736_p10 }
  0x5f   : > { %p1732_p12 = pneg %p1731_p11 }
  0x61   : > { %p1739_p4 = pnand %p1738_p1, %p1732_p12 }
  0x63   : > { %1742 = shalt.err (!%p1739_p4)
}
  0x64   : > { %s1892_s29 = smov 64   ;;  %s1893_s10 = smov 4  }
  0x65   : > { %1570 = dma.hbm_to_vmem [thread:$0]  (!%p2073_p5), %s2330_s6, 1024, %s2077_s21, [#allocation14], %s1892_s29, %s1892_s29, %s1893_s10  }
  0x66   : > { %s1743_s19 = scalar_lea.hbm %s2048_s15, 2048  ;;  %p2361_p8 = scmp.ne.s32.totalorder %s2355_s25, 0 }
  0x67   : > { %p1744_p9 = scmp.ne.s32.totalorder %s2048_s15, %s1743_s19  ;;  %s1748_s27 = scalar_lea.hbm %s2328_s4, 4096 }
  0x68   : > { %p2362_p6 = pneg %p2361_p8  ;;  %p1749_p3 = scmp.lt.u32.totalorder %s2048_s15, %s2328_s4 }
  0x69   : > { %p1750_p7 = scmp.lt.u32.totalorder %s1748_s27, %s1743_s19  ;;  %p1752_p12 = scmp.lt.u32.totalorder %s1743_s19, %s2048_s15 }
  0x6a   : > { %p1746_p13 = pnand %p1744_p9, %p2362_p6 }
  0x6b   : > { %p1751_p11 = por %p1750_p7, %p1749_p3 }
  0x6c   : > { %p1747_p2 = pneg %p1746_p13 }
  0x6d   : > { %p1753_p10 = por %p1752_p12, %p1751_p11 }
  0x6f   : > { %p1754_p0 = pnand %p1753_p10, %p1747_p2 }
  0x71   : > { %1757 = shalt.err (!%p1754_p0)
}
  0x72   : > { %s1758_s12 = scalar_lea.vmem %s2079_s20, 2048  ;;  %p2363_p1 = pmov %p2362_p6 }
  0x73   : > { %p1759_p5 = scmp.ne.s32.totalorder %s2079_s20, %s1758_s12  ;;  %s1894_s21 = smov [#allocation12]  }
  0x74   : > { %s1763_s29 = sshll.u32 %s1894_s21, 4  ;;  %s1764_s29 = int_to_ptr.vmem [resolvable:$false] %s1763_s29 }
  0x75   : > { %p1761_p4 = pnand %p1759_p5, %p2363_p1  ;;  %s1765_s10 = scalar_lea.vmem %s1764_s29, 4096 }
  0x76   : > { %p1766_p6 = scmp.lt.s32.totalorder %s2079_s20, %s1764_s29  ;;  %p1767_p13 = scmp.lt.s32.totalorder %s1765_s10, %s1758_s12 }
  0x77   : > { %p1762_p9 = pneg %p1761_p4 }
  0x78   : > { %p1768_p3 = por %p1767_p13, %p1766_p6 }
  0x7a   : > { %p1769_p7 = pnand %p1768_p3, %p1762_p9 }
  0x7c   : > { %1772 = shalt.err (!%p1769_p7)
}
  0x7d   : > { %1577 = dma.hbm_to_vmem [thread:$0]  (!%p2361_p8), %s2048_s15, 2048, %s2079_s20, %s2012_s26, %s2360_s13, %s2360_s13, %s2359_s3  }
  0x7e   : > { %p2364_p2 = scmp.ne.s32.totalorder %s2357_s22, 0 }
  0x7f   : > { %p2365_p11 = scmp.eq.s32.totalorder (!%p2364_p2), %s2051_s23, 0 }
  0x80   : > { %328 = sbr.rel (%p2364_p2) target bundleno = 1699 (0x6a3), region = 48 }
  0x87   : > { %1846 = dma.done.wait (%p2365_p11), [#allocation8], 256   ;;  %p2366_p12 = pmov %p2365_p11 }
  0x88   : > { %s334_s25 = sand.u32 1, %s2051_s23   ;;  %s336_s17 = sand.u32 1, %s1869_s28  }
  0x89   : > { %1848 = vsyncadd (%p2366_p12), [#allocation8], 4294967040  ;;  %s1249_s11 = sshll.u32 %s336_s17, 7  ;;  %s335_s19 = scalar_lea.sflag [#allocation11], %s334_s25 }
  0x8a   : > { %s2166_s18 = scalar_lea.vmem [#allocation10], %s1249_s11  ;;  %p2367_p10 = scmp.ne.s32.totalorder %s2356_s14, 0 }
  0x8c   : > { %1850 = dma.done.wait (%p2367_p10), %s335_s19, 4096  }
  0x8d   : > { %1852 = vsyncadd (%p2367_p10), %s335_s19, 4294963200  ;;  %s2172_s26 = scalar_lea.vmem [#allocation12], %s1249_s11  ;;  %p2368_p8 = pmov %p2365_p11 }
  0x8f   : > { %1854 = dma.done.wait (%p2368_p8), [#allocation14], 1024   ;;  %p2369_p0 = pmov %p2368_p8 }
  0x90   : > { %p387_p5 = scmp.lt.s32.totalorder %s1877_s30, 1  ;;  %p392_p1 = scmp.eq.s32.totalorder %s1877_s30, 0 }
  0x91   : > { %1856 = vsyncadd (%p2369_p0), [#allocation14], 4294966272  ;;  %s1895_s13 = smov (%p392_p1), [#allocation2]   ;;  %s1773_s24 = scalar_lea.hbm (%p392_p1), %s2325_s1, 1024 }
  0x92   : > { %s388_s15 = scalar_select %p387_p5, %s1877_s30, 1 }
  0x93   : > { %397 = sbr.rel (!%p392_p1) target bundleno = 171 (0xab), region = 68  ;;  %s405_s16 = sshll.u32 (%p392_p1), %s1895_s13, 4  ;;  %s406_s16 = int_to_ptr.vmem [resolvable:$true] %s405_s16 }
  0x94   : > { %s1252_s22 = sshll.u32 %s388_s15, 2  ;;  %p1774_p4 = scmp.ne.s32.totalorder (%p392_p1), %s2325_s1, %s1773_s24 }
  0x95   : > { %s2184_s14 = scalar_lea.vmem %s2329_s5, %s1252_s22  ;;  %p1777_p9 = scmp.lt.u32.totalorder (%p392_p1), %s1773_s24, %s2325_s1 }
  0x97   : > { %p1779_p6 = pnand (%p392_p1), %p1777_p9, %p1774_p4 }
  0x9a   : > { %1782 = shalt.err (!%p1779_p6)  }
  0x9b   : > { %s1783_s25 = scalar_lea.vmem %s406_s16, 1024  ;;  %p1788_p3 = scmp.lt.s32.totalorder %s406_s16, %s406_s16 }
  0x9c   : > { %p1784_p13 = scmp.ne.s32.totalorder %s406_s16, %s1783_s25  ;;  %p1789_p7 = scmp.lt.s32.totalorder %s1783_s25, %s1783_s25 }
  0x9e   : > { %p1790_p2 = por %p1789_p7, %p1788_p3 }
  0xa0   : > { %p1791_p11 = pnand %p1790_p2, %p1784_p13 }
  0xa2   : > { %1794 = shalt.err (!%p1791_p11)  }
  0xa3   : > { %408 = dma.hbm_to_vmem [thread:$0]  %s2325_s1, 1024, %s406_s16, [#allocation6] }
  0xa4   : > { %1857 = dma.done.wait [#allocation6], 1024 }
  0xa5   : > { %1858 = vsyncadd [#allocation6], 4294966272  ;;  %v412_v0 = vld [vmem:[#allocation2] sm:$0xff]  ;;  %v413_v1 = vld [vmem:[#allocation2 + $0x8] sm:$0xff] }
  0xa6   : > { %v414_v2 = vld [vmem:[#allocation2 + $0x10] sm:$0xff]  ;;  %v420_v3 = vpack.c.bf16 %v413_v1, %v412_v0  ;;  %v415_v4 = vld [vmem:[#allocation2 + $0x18] sm:$0xff]  ;;  %v416_v5 = vld [vmem:[#allocation2 + $0x20] sm:$0xff] }
  0xa7   : > { %v417_v6 = vld [vmem:[#allocation2 + $0x28] sm:$0xff]  ;;  %v421_v7 = vpack.c.bf16 %v415_v4, %v414_v2  ;;  %v418_v9 = vld [vmem:[#allocation2 + $0x30] sm:$0xff]  ;;  %v419_v10 = vld [vmem:[#allocation2 + $0x38] sm:$0xff] }
  0xa8   : > { %v422_v8 = vpack.c.bf16 %v417_v6, %v416_v5  ;;  %424 = vst [vmem:[#allocation3] sm:$0xff] %v420_v3  ;;  %v423_v11 = vpack.c.bf16 %v419_v10, %v418_v9 }
  0xa9   : > { %425 = vst [vmem:[#allocation3 + $0x8] sm:$0xff] %v421_v7 }
  0xaa   : > { %426 = vst [vmem:[#allocation3 + $0x10] sm:$0xff] %v422_v8  ;;  %427 = vst [vmem:[#allocation3 + $0x18] sm:$0xff] %v423_v11 }
  0xab PF: > { %v434_v14 = vld [vmem:[#allocation7] sm:$0xff]  ;;  %vm444_vm0 = vcmask 523264   ;;  %v540_v16 = vld [vmem:[%s2166_s18] sm:$0xff]  ;;  %v541_v17 = vld [vmem:[%s2166_s18 + $0x8] sm:$0xff]  ;;  %p923_p12 = scmp.eq.s32.totalorder %s1877_s30, 1 }
  0xac   : > { %v436_v15 = vunpack.c.l.s8.bf16 %v434_v14  ;;  %v542_v18 = vld [vmem:[%s2166_s18 + $0x10] sm:$0xff]  ;;  %v1484_v19 = vpack.c.bf16 %v541_v17, %v540_v16  ;;  %v543_v20 = vld [vmem:[%s2166_s18 + $0x18] sm:$0xff]  ;;  %v544_v23 = vld [vmem:[%s2166_s18 + $0x20] sm:$0xff]  ;;  %v437_v33 = vunpack.c.h.s8.bf16 %v434_v14  ;;  %vm1897_vm1 = vmmov (%p923_p12), 0  }
  0xad   : > { %v1488_v22 = vpack.c.bf16 %v543_v20, %v542_v18  ;;  %v545_v24 = vld [vmem:[%s2166_s18 + $0x28] sm:$0xff]  ;;  %v546_v27 = vld [vmem:[%s2166_s18 + $0x30] sm:$0xff]  ;;  %v547_v28 = vld [vmem:[%s2166_s18 + $0x38] sm:$0xff]  ;;  %vm1092_vm3 = vcmask (%p923_p12), 1041408  }
  0xae   : > { %1356 = vmatprep.mubr.msk.bf16.mxu0 %vm444_vm0, %v436_v15  ;;  %1485 = vmatprep.subr.bf16.mxu1 %v1484_v19  ;;  %v1492_v25 = vpack.c.bf16 %v545_v24, %v544_v23  ;;  %v435_v29 = vld [vmem:[#allocation7 + $0x8] sm:$0xff]  ;;  %v1496_v30 = vpack.c.bf16 %v547_v28, %v546_v27  ;;  %v548_v31 = vld [vmem:[%s2166_s18 + $0x40] sm:$0xff]  ;;  %v549_v32 = vld [vmem:[%s2166_s18 + $0x48] sm:$0xff] }
  0xaf   : > { %v440_v12 = vld [vmem:[#allocation3] sm:$0xff]  ;;  %1487 = vmatpush3.bf16.msra.mxu1 %v1484_v19  ;;  %v438_v34 = vunpack.c.l.s8.bf16 %v435_v29  ;;  %v1500_v35 = vpack.c.bf16 %v549_v32, %v548_v31  ;;  %v551_v37 = vld [vmem:[%s2166_s18 + $0x58] sm:$0xff]  ;;  %v552_v39 = vld [vmem:[%s2166_s18 + $0x60] sm:$0xff]  ;;  %v439_v41 = vunpack.c.h.s8.bf16 %v435_v29 }
  0xb0   : > { %v441_v13 = vld [vmem:[#allocation3 + $0x8] sm:$0xff]  ;;  %1348 = vmatprep.subr.bf16.mxu0 %v440_v12  ;;  %1489 = vmatprep.subr.bf16.mxu1 %v1488_v22  ;;  %v550_v36 = vld [vmem:[%s2166_s18 + $0x50] sm:$0xff]  ;;  %v553_v40 = vld [vmem:[%s2166_s18 + $0x68] sm:$0xff] }
  0xb1   : > { %1349 = vmatpush3.bf16.msra.mxu0 %v440_v12  ;;  %v442_v21 = vld [vmem:[#allocation3 + $0x10] sm:$0xff]  ;;  %v443_v26 = vld [vmem:[#allocation3 + $0x18] sm:$0xff]  ;;  %v1504_v38 = vpack.c.bf16 %v551_v37, %v550_v36  ;;  %v1508_v42 = vpack.c.bf16 %v553_v40, %v552_v39  ;;  %v554_v43 = vld [vmem:[%s2166_s18 + $0x70] sm:$0xff] }
  0xb2   : > { %1350 = vmatprep.subr.bf16.mxu0 %v441_v13  ;;  %v555_v44 = vld [vmem:[%s2166_s18 + $0x78] sm:$0xff]  ;;  %v673_v46 = vld [vmem:[%s2172_s26] sm:$0xff]  ;;  %v674_v47 = vld [vmem:[%s2172_s26 + $0x8] sm:$0xff] }
  0xb3   : > { %1491 = vmatpush3.bf16.msra.mxu1 %v1488_v22  ;;  %v1512_v45 = vpack.c.bf16 %v555_v44, %v554_v43  ;;  %v675_v48 = vld [vmem:[%s2172_s26 + $0x10] sm:$0xff]  ;;  %v1516_v49 = vpack.c.bf16 %v674_v47, %v673_v46  ;;  %v676_v50 = vld [vmem:[%s2172_s26 + $0x18] sm:$0xff]  ;;  %v677_v52 = vld [vmem:[%s2172_s26 + $0x20] sm:$0xff] }
  0xb4   : > { %1493 = vmatprep.subr.bf16.mxu1 %v1492_v25  ;;  %v1520_v51 = vpack.c.bf16 %v676_v50, %v675_v48  ;;  %v678_v53 = vld [vmem:[%s2172_s26 + $0x28] sm:$0xff]  ;;  %v679_v55 = vld [vmem:[%s2172_s26 + $0x30] sm:$0xff]  ;;  %v680_v56 = vld [vmem:[%s2172_s26 + $0x38] sm:$0xff] }
  0xb5   : > { %1351 = vmatpush3.bf16.msra.mxu0 %v441_v13  ;;  %v1524_v54 = vpack.c.bf16 %v678_v53, %v677_v52  ;;  %v1528_v57 = vpack.c.bf16 %v680_v56, %v679_v55  ;;  %v681_v58 = vld [vmem:[%s2172_s26 + $0x40] sm:$0xff]  ;;  %v682_v59 = vld [vmem:[%s2172_s26 + $0x48] sm:$0xff]  ;;  %v683_v61 = vld [vmem:[%s2172_s26 + $0x50] sm:$0xff] }
  0xb6   : > { %1352 = vmatprep.subr.bf16.mxu0 %v442_v21  ;;  %v1532_v60 = vpack.c.bf16 %v682_v59, %v681_v58  ;;  %v684_v62 = vld [vmem:[%s2172_s26 + $0x58] sm:$0xff]  ;;  %v685_v0 = vld [vmem:[%s2172_s26 + $0x60] sm:$0xff]  ;;  %v686_v1 = vld [vmem:[%s2172_s26 + $0x68] sm:$0xff] }
  0xb7   : > { %1495 = vmatpush3.bf16.msra.mxu1 %v1492_v25  ;;  %v1536_v63 = vpack.c.bf16 %v684_v62, %v683_v61  ;;  %v1540_v2 = vpack.c.bf16 %v686_v1, %v685_v0  ;;  %v523_v3 = vld [vmem:[#allocation2] sm:$0xff]  ;;  %v524_v6 = vld [vmem:[#allocation2 + $0x8] sm:$0xff]  ;;  %v525_v7 = vld [vmem:[#allocation2 + $0x10] sm:$0xff] }
  0xb8   : > { %1497 = vmatprep.subr.bf16.mxu1 %v1496_v30  ;;  %v526_v13 = vld [vmem:[#allocation2 + $0x18] sm:$0xff]  ;;  %v527_v14 = vld [vmem:[#allocation2 + $0x20] sm:$0xff]  ;;  %v528_v18 = vld [vmem:[#allocation2 + $0x28] sm:$0xff] }
  0xb9   : > { %1353 = vmatpush3.bf16.msra.mxu0 %v442_v21  ;;  %v529_v19 = vld [vmem:[#allocation2 + $0x30] sm:$0xff]  ;;  %v530_v25 = vld [vmem:[#allocation2 + $0x38] sm:$0xff]  ;;  %v687_v27 = vld [vmem:[%s2172_s26 + $0x70] sm:$0xff] }
  0xba   : > { %1354 = vmatprep.subr.bf16.mxu0 %v443_v26  ;;  %v688_v28 = vld [vmem:[%s2172_s26 + $0x78] sm:$0xff] }
  0xbb   : > { %1499 = vmatpush3.bf16.msra.mxu1 %v1496_v30  ;;  %v1544_v29 = vpack.c.bf16 %v688_v28, %v687_v27  ;;  %v556_v30 = vlaneseq }
  0xbc   : > { %1501 = vmatprep.subr.bf16.mxu1 %v1500_v35 }
  0xbd   : > { %1355 = vmatpush3.bf16.msra.mxu0 %v443_v26  ;;  %v2235_v31 = vshrl.u32 %v556_v30, 7 }
  0xbe   : > { %1517 = vmatprep.subr.bf16.mxu0 %v1516_v49 }
  0xbf   : > { %1503 = vmatpush3.bf16.msra.mxu1 %v1500_v35  ;;  %v558_v32 = vsub.s32 0, %v2235_v31  ;;  %v691_v59 = vsub.s32 1, %v2235_v31 }
  0xc0   : > { %1357 = vmatmul.mubr.msk.bf16.vlgmr.msra.gmra.mrb[0].mxu0 %vm444_vm0, %v437_v33  ;;  %1505 = vmatprep.subr.bf16.mxu1 %v1504_v38  ;;  %v2239_v33 = vld [vmem:[%s2184_s14] sm:$0xf] }
  0xc1   : > { %1360 = vmatprep.mubr.msk.bf16.mxu0 %vm444_vm0, %v438_v34  ;;  %1519 = vmatpush3.bf16.msra.mxu0 %v1516_v49  ;;  %v559_v34 = vrot.slane %v2239_v33, %v558_v32 }
  0xc2   : > { %1521 = vmatprep.subr.bf16.mxu0 %v1520_v51 }
  0xc3   : > { %1507 = vmatpush3.bf16.msra.mxu1 %v1504_v38 }
  0xc4   : > { %1509 = vmatprep.subr.bf16.mxu1 %v1508_v42 }
  0xc5   : > { %1523 = vmatpush3.bf16.msra.mxu0 %v1520_v51 }
  0xc6   : > { %1525 = vmatprep.subr.bf16.mxu0 %v1524_v54 }
  0xc7   : > { %1511 = vmatpush3.bf16.msra.mxu1 %v1508_v42 }
  0xc8   : > { %1361 = vmatmul.mubr.msk.bf16.gmra.mrb[4].mxu0 %vm444_vm0, %v439_v41  ;;  %1513 = vmatprep.subr.bf16.mxu1 %v1512_v45 }
  0xc9   : > { %1527 = vmatpush3.bf16.msra.mxu0 %v1524_v54 }
  0xca   : > { %1529 = vmatprep.subr.bf16.mxu0 %v1528_v57 }
  0xcb   : > { %1515 = vmatpush3.bf16.msra.mxu1 %v1512_v45 }
  0xcd   : > { %1531 = vmatpush3.bf16.msra.mxu0 %v1528_v57 }
  0xce   : > { %1533 = vmatprep.subr.bf16.mxu0 %v1532_v60 }
  0xd1   : > { %1535 = vmatpush3.bf16.msra.mxu0 %v1532_v60  ;;  %v692_v60 = vrot.slane %v2239_v33, %v691_v59 }
  0xd2   : > { %1537 = vmatprep.subr.bf16.mxu0 %v1536_v63 }
  0xd5   : > { %1539 = vmatpush3.bf16.msra.mxu0 %v1536_v63 }
  0xd6   : > { %1541 = vmatprep.subr.bf16.mxu0 %v1540_v2 }
  0xd9   : > { %1543 = vmatpush3.bf16.msra.mxu0 %v1540_v2 }
  0xda   : > { %1545 = vmatprep.subr.bf16.mxu0 %v1544_v29 }
  0xdd   : > { %1547 = vmatpush3.bf16.msra.mxu0 %v1544_v29 }
 0x193   : > { %v1358_v4 = vpop.f32.mrb[0].mxu0 }
 0x194   : > { %v491_v5 = vpop.f32.mrb[1].mxu0  ;;  %v533_v12 = vadd.f32 %v1358_v4, %v525_v7 }
 0x195   : > { %v1359_v8 = vpop.f32.mrb[2].mxu0  ;;  %v531_v9 = vadd.f32 %v523_v3, %v491_v5 }
 0x196   : > { %v494_v10 = vpop.f32.mrb[3].mxu0  ;;  %v534_v15 = vadd.f32 %v1359_v8, %v526_v13 }
 0x197   : > { %v532_v11 = vadd.f32 %v524_v6, %v494_v10  ;;  %1396 = vmatprep.mubr.f32.mxu1 %v531_v9 }
 0x199   : > { %1397 = vmatmul.mubr.f32.vlgmr.msra.gmra.mrb[0].mxu1 %v532_v11 }
 0x19a   : > { %1399 = vmatprep.mubr.f32.mxu1 %v533_v12 }
 0x19b   : > { %v1362_v16 = vpop.f32.mrb[4].mxu0 }
 0x19c   : > { %v507_v17 = vpop.f32.mrb[5].mxu0  ;;  %v537_v24 = vadd.f32 %v1362_v16, %v529_v19 }
 0x19d   : > { %v535_v20 = vadd.f32 %v527_v14, %v507_v17  ;;  %v1363_v21 = vpop.f32.mrb[6].mxu0  ;;  %1400 = vmatmul.mubr.f32.gmra.mrb[2].mxu1 %v534_v15 }
 0x19e   : > { %v510_v22 = vpop.f32.mrb[7].mxu0  ;;  %v538_v26 = vadd.f32 %v1363_v21, %v530_v25 }
 0x19f   : > { %v536_v23 = vadd.f32 %v528_v18, %v510_v22  ;;  %1402 = vmatprep.mubr.f32.mxu1 %v535_v20 }
 0x1a1   : > { %1403 = vmatmul.mubr.f32.gmra.mrb[4].mxu1 %v536_v23 }
 0x1a2   : > { %1405 = vmatprep.mubr.f32.mxu1 %v537_v24 }
 0x1a5   : > { %1406 = vmatmul.mubr.f32.gmra.mrb[6].mxu1 %v538_v26 }
 0x26c   : > { %v1398_v35 = vpop.f32.mrb[0].mxu1 }
 0x26d   : > { %v632_v36 = vadd.f32 %v1398_v35, %v559_v34  ;;  %v626_v37 = vpop.f32.mrb[1].mxu1 }
 0x26e   : > { %v627_v38 = vadd.f32 %v626_v37, %v559_v34 }
 0x26f   : > { %v666_v41 = vmax.f32 %v632_v36, 0.0 }
 0x270   : > { %v665_v39 = vmax.f32 %v627_v38, 0.0  ;;  %v1401_v40 = vpop.f32.mrb[2].mxu1 }
 0x271   : > { %v642_v42 = vadd.f32 %v1401_v40, %v559_v34  ;;  %v636_v43 = vpop.f32.mrb[3].mxu1 }
 0x272   : > { %v637_v44 = vadd.f32 %v636_v43, %v559_v34  ;;  %1440 = vmatprep.mubr.f32.mxu0 %v665_v39 }
 0x273   : > { %1441 = vmatmul.mubr.f32.vlgmr.msra.gmra.mrb[8].mxu0 %v666_v41  ;;  %v668_v47 = vmax.f32 %v642_v42, 0.0 }
 0x274   : > { %v667_v45 = vmax.f32 %v637_v44, 0.0  ;;  %v1404_v46 = vpop.f32.mrb[4].mxu1 }
 0x275   : > { %v652_v48 = vadd.f32 %v1404_v46, %v559_v34  ;;  %v646_v49 = vpop.f32.mrb[5].mxu1 }
 0x276   : > { %v647_v50 = vadd.f32 %v646_v49, %v559_v34  ;;  %1443 = vmatprep.mubr.f32.mxu0 %v667_v45 }
 0x277   : > { %1444 = vmatmul.mubr.f32.gmra.mrb[10].mxu0 %v668_v47  ;;  %v670_v53 = vmax.f32 %v652_v48, 0.0 }
 0x278   : > { %v669_v51 = vmax.f32 %v647_v50, 0.0  ;;  %v1407_v52 = vpop.f32.mrb[6].mxu1 }
 0x279   : > { %v662_v54 = vadd.f32 %v1407_v52, %v559_v34  ;;  %v656_v55 = vpop.f32.mrb[7].mxu1 }
 0x27a   : > { %v657_v56 = vadd.f32 %v656_v55, %v559_v34  ;;  %1446 = vmatprep.mubr.f32.mxu0 %v669_v51 }
 0x27b   : > { %1447 = vmatmul.mubr.f32.gmra.mrb[12].mxu0 %v670_v53  ;;  %v672_v58 = vmax.f32 %v662_v54, 0.0 }
 0x27c   : > { %v671_v57 = vmax.f32 %v657_v56, 0.0 }
 0x27e   : > { %1449 = vmatprep.mubr.f32.mxu0 %v671_v57 }
 0x27f   : > { %1450 = vmatmul.mubr.f32.gmra.mrb[14].mxu0 %v672_v58 }
 0x346   : > { %v1442_v61 = vpop.f32.mrb[8].mxu0 }
 0x347   : > { %v2245_v62 = vadd.f32 %v1442_v61, %v692_v60  ;;  %v759_v63 = vpop.f32.mrb[9].mxu0 }
 0x348   : > { %v2247_v0 = vadd.f32 %v759_v63, %v692_v60 }
 0x349   : > { %v818_v1 = vmul.f32 %v2245_v62, %v2245_v62 }
 0x34a   : > { %v807_v2 = vadd.f32 %v2245_v62, %v2247_v0  ;;  %v817_v3 = vmul.f32 %v2247_v0, %v2247_v0  ;;  %v1445_v4 = vpop.f32.mrb[10].mxu0 }
 0x34b   : > { %v769_v5 = vpop.f32.mrb[11].mxu0  ;;  %v2255_v7 = vadd.f32 %v1445_v4, %v692_v60 }
 0x34c   : > { %v825_v6 = vadd.f32 %v818_v1, %v817_v3  ;;  %v2257_v8 = vadd.f32 %v769_v5, %v692_v60  ;;  %v877_v3 = vsub.s32 2, %v2235_v31 }
 0x34d   : > { %v820_v14 = vmul.f32 %v2255_v7, %v2255_v7 }
 0x34e   : > { %v808_v9 = vadd.f32 %v807_v2, %v2257_v8  ;;  %v819_v10 = vmul.f32 %v2257_v8, %v2257_v8  ;;  %v1448_v11 = vpop.f32.mrb[12].mxu0  ;;  %v889_v2 = vsub.s32 3, %v2235_v31 }
 0x34f   : > { %v785_v12 = vadd.f32 %v1448_v11, %v692_v60  ;;  %v779_v13 = vpop.f32.mrb[13].mxu0 }
 0x350   : > { %v826_v15 = vadd.f32 %v825_v6, %v819_v10  ;;  %v780_v16 = vadd.f32 %v779_v13, %v692_v60  ;;  %v809_v17 = vadd.f32 %v808_v9, %v2255_v7 }
 0x351   : > { %v822_v22 = vmul.f32 %v785_v12, %v785_v12 }
 0x352   : > { %v810_v18 = vadd.f32 %v809_v17, %v780_v16  ;;  %v821_v19 = vmul.f32 %v780_v16, %v780_v16  ;;  %v827_v20 = vadd.f32 %v826_v15, %v820_v14  ;;  %v1451_v21 = vpop.f32.mrb[14].mxu0 }
 0x353   : > { %v789_v23 = vpop.f32.mrb[15].mxu0  ;;  %v795_v25 = vadd.f32 %v1451_v21, %v692_v60 }
 0x354   : > { %v828_v24 = vadd.f32 %v827_v20, %v821_v19  ;;  %v790_v26 = vadd.f32 %v789_v23, %v692_v60  ;;  %v811_v27 = vadd.f32 %v810_v18, %v785_v12 }
 0x355   : > { %v824_v34 = vmul.f32 %v795_v25, %v795_v25 }
 0x356   : > { %v812_v28 = vadd.f32 %v811_v27, %v790_v26  ;;  %v823_v29 = vmul.f32 %v790_v26, %v790_v26  ;;  %v829_v32 = vadd.f32 %v828_v24, %v822_v22 }
 0x358   : > { %v813_v35 = vadd.f32 %v812_v28, %v795_v25  ;;  %v830_v36 = vadd.f32 %v829_v32, %v823_v29 }
 0x35a   : > { %v831_v37 = vadd.f32 %v830_v36, %v824_v34  ;;  %v838_v38 = vrot.slane %v813_v35, 4  ;;  %v1896_v36 = vmov (%p923_p12), 0.0  }
 0x35b   : > { %1452 = vmatprep.subr.bf16.mxu0 (%p923_p12), %v1896_v36  ;;  %1460 = vmatprep.mubr.msk.bf16.mxu0 (%p923_p12), %vm1897_vm1, %v1896_v36 }
 0x35c   : > { %v839_v39 = vadd.f32 %v838_v38, %v813_v35  ;;  %v846_v40 = vrot.slane %v831_v37, 4  ;;  %1464 = vmatprep.subr.bf16.mxu1 (%p923_p12), %v1896_v36  ;;  %1480 = vmatprep.mubr.msk.bf16.mxu1 (%p923_p12), %vm1897_vm1, %v1896_v36 }
 0x35e   : > { %v840_v41 = vrot.slane %v839_v39, 2  ;;  %v847_v42 = vadd.f32 %v846_v40, %v831_v37  ;;  %v1645_v37 = vld [vmem:[#allocation13] sm:$0xff] (%p923_p12)  }
 0x35f   : > { %1465 = vmatpush3.bf16.msra.mxu1 (%p923_p12), %v1645_v37 }
 0x360   : > { %v841_v43 = vadd.f32 %v840_v41, %v839_v39  ;;  %v848_v44 = vrot.slane %v847_v42, 2  ;;  %v1646_v39 = vld [vmem:[#allocation13 + $0x8] sm:$0xff] (%p923_p12)   ;;  %1466 = vmatprep.subr.bf16.mxu1 (%p923_p12), %v1896_v36  ;;  %v1647_v41 = vld [vmem:[#allocation13 + $0x10] sm:$0xff] (%p923_p12)  }
 0x362   : > { %v842_v45 = vrot.slane %v841_v43, 1  ;;  %v849_v46 = vadd.f32 %v848_v44, %v847_v42  ;;  %v928_v44 = vld [vmem:[%s2326_s2] sm:$0x1] (%p923_p12) }
 0x363   : > { %1467 = vmatpush3.bf16.msra.mxu1 (%p923_p12), %v1646_v39 }
 0x364   : > { %v843_v47 = vadd.f32 %v842_v45, %v841_v43  ;;  %v850_v48 = vrot.slane %v849_v46, 1  ;;  %1468 = vmatprep.subr.bf16.mxu1 (%p923_p12), %v1896_v36  ;;  %v1648_v43 = vld [vmem:[#allocation13 + $0x18] sm:$0xff] (%p923_p12)   ;;  %v1649_v45 = vld [vmem:[#allocation13 + $0x20] sm:$0xff] (%p923_p12)  }
 0x366   : > { %v844_v49 = vmul.f32 0.015625, %v843_v47  ;;  %v851_v50 = vadd.f32 %v850_v48, %v849_v46  ;;  %v1650_v46 = vld [vmem:[#allocation13 + $0x28] sm:$0xff] (%p923_p12)   ;;  %v1651_v47 = vld [vmem:[#allocation13 + $0x30] sm:$0xff] (%p923_p12)   ;;  %v1652_v48 = vld [vmem:[#allocation13 + $0x38] sm:$0xff] (%p923_p12)  }
 0x367   : > { %1469 = vmatpush3.bf16.msra.mxu1 (%p923_p12), %v1647_v41 }
 0x368   : > { %v852_v51 = vmul.f32 0.015625, %v851_v50  ;;  %v853_v52 = vmul.f32 %v844_v49, %v844_v49  ;;  %v867_v53 = vsub.f32 %v2247_v0, %v844_v49  ;;  %v868_v54 = vsub.f32 %v2245_v62, %v844_v49  ;;  %1470 = vmatprep.subr.bf16.mxu1 (%p923_p12), %v1896_v36 }
 0x369   : > { %v869_v55 = vsub.f32 %v2257_v8, %v844_v49  ;;  %v870_v56 = vsub.f32 %v2255_v7, %v844_v49  ;;  %v871_v57 = vsub.f32 %v780_v16, %v844_v49  ;;  %v872_v58 = vsub.f32 %v785_v12, %v844_v49 }
 0x36a   : > { %v854_v59 = vsub.f32 %v852_v51, %v853_v52  ;;  %v873_v60 = vsub.f32 %v790_v26, %v844_v49  ;;  %v874_v61 = vsub.f32 %v795_v25, %v844_v49  ;;  %v890_v62 = vrot.slane %v2239_v33, %v889_v2 }
 0x36b   : > { %1471 = vmatpush3.bf16.msra.mxu1 (%p923_p12), %v1648_v43 }
 0x36c   : > { %v855_v63 = vmax.f32 %v854_v59, 0.0  ;;  %1472 = vmatprep.subr.bf16.mxu1 (%p923_p12), %v1896_v36 }
 0x36e   : > { %v856_v1 = vadd.f32 1e-05, %v855_v63 }
 0x36f   : > { %1473 = vmatpush3.bf16.msra.mxu1 (%p923_p12), %v1649_v45 }
 0x370   : > { %1643 = vrsqrt.f32 %v856_v1  ;;  %1474 = vmatprep.subr.bf16.mxu1 (%p923_p12), %v1896_v36 }
 0x373   : > { %1475 = vmatpush3.bf16.msra.mxu1 (%p923_p12), %v1650_v46 }
 0x374   : > { %1476 = vmatprep.subr.bf16.mxu1 (%p923_p12), %v1896_v36 }
 0x377   : > { %1477 = vmatpush3.bf16.msra.mxu1 (%p923_p12), %v1651_v47 }
 0x378   : > { %1478 = vmatprep.subr.bf16.mxu1 (%p923_p12), %v1896_v36 }
 0x37a   : > { %v1644_v4 = vpop.eup %1643 }
 0x37b   : > { %v858_v0 = vmul.f32 %v1644_v4, %v2239_v33  ;;  %1479 = vmatpush3.bf16.msra.mxu1 (%p923_p12), %v1652_v48 }
 0x37d   : > { %v878_v5 = vrot.slane %v858_v0, %v877_v3 }
 0x37f   : > { %v879_v6 = vmul.f32 %v878_v5, %v867_v53  ;;  %v880_v7 = vmul.f32 %v878_v5, %v868_v54  ;;  %v881_v8 = vmul.f32 %v878_v5, %v869_v55  ;;  %v882_v9 = vmul.f32 %v878_v5, %v870_v56  ;;  %v1260_v55 = vld [vmem:[%s2331_s7] ss:$0 sm:$0xff] (%p923_p12) }
 0x380   : > { %v883_v10 = vmul.f32 %v878_v5, %v871_v57  ;;  %v884_v11 = vmul.f32 %v878_v5, %v872_v58  ;;  %v885_v12 = vmul.f32 %v878_v5, %v873_v60  ;;  %v886_v13 = vmul.f32 %v878_v5, %v874_v61 }
 0x381   : > { %v891_v14 = vadd.f32 %v890_v62, %v879_v6  ;;  %v892_v15 = vadd.f32 %v890_v62, %v880_v7  ;;  %v893_v16 = vadd.f32 %v890_v62, %v881_v8  ;;  %v894_v17 = vadd.f32 %v890_v62, %v882_v9 }
 0x382   : > { %v895_v18 = vadd.f32 %v890_v62, %v883_v10  ;;  %v896_v31 = vadd.f32 %v890_v62, %v884_v11  ;;  %v897_v19 = vadd.f32 %v890_v62, %v885_v12  ;;  %v898_v20 = vadd.f32 %v890_v62, %v886_v13 }
 0x383   : > { %v899_v21 = vmax.f32 %v891_v14, 0.0  ;;  %v900_v22 = vmax.f32 %v892_v15, 0.0  ;;  %v901_v33 = vmax.f32 %v893_v16, 0.0  ;;  %v902_v23 = vmax.f32 %v894_v17, 0.0 }
 0x384   : > { %v903_v24 = vmax.f32 %v895_v18, 0.0  ;;  %v904_v25 = vmax.f32 %v896_v31, 0.0  ;;  %v905_v26 = vmax.f32 %v897_v19, 0.0  ;;  %v906_v27 = vmax.f32 %v898_v20, 0.0  ;;  %927 = sbr.rel (!%p923_p12) target bundleno = 1674 (0x68a), region = 84 }
 0x385   : > { %907 = vst [vmem:[#allocation2] sm:$0xff] %v899_v21  ;;  %908 = vst [vmem:[#allocation2 + $0x8] sm:$0xff] %v900_v22  ;;  %v915_v28 = vpack.c.bf16 %v900_v22, %v899_v21  ;;  %v916_v29 = vpack.c.bf16 %v902_v23, %v901_v33  ;;  %v1089_v54 = vand.u32 (%p923_p12), 127, %v556_v30 }
 0x386   : > { %909 = vst [vmem:[#allocation2 + $0x10] sm:$0xff] %v901_v33  ;;  %910 = vst [vmem:[#allocation2 + $0x18] sm:$0xff] %v902_v23  ;;  %v917_v32 = vpack.c.bf16 %v904_v25, %v903_v24  ;;  %v918_v34 = vpack.c.bf16 %v906_v27, %v905_v26 }
 0x387   : > { %911 = vst [vmem:[#allocation2 + $0x20] sm:$0xff] %v903_v24  ;;  %912 = vst [vmem:[#allocation2 + $0x28] sm:$0xff] %v904_v25  ;;  %vm1090_vm2 = vcmp.lt.s32.totalorder (%p923_p12), %v1089_v54, 4 }
 0x388   : > { %913 = vst [vmem:[#allocation2 + $0x30] sm:$0xff] %v905_v26  ;;  %914 = vst [vmem:[#allocation2 + $0x38] sm:$0xff] %v906_v27 }
 0x389   : > { %919 = vst [vmem:[#allocation3] sm:$0xff] %v915_v28  ;;  %920 = vst [vmem:[#allocation3 + $0x8] sm:$0xff] %v916_v29 }
 0x38a   : > { %921 = vst [vmem:[#allocation3 + $0x10] sm:$0xff] %v917_v32  ;;  %922 = vst [vmem:[#allocation3 + $0x18] sm:$0xff] %v918_v34 }
 0x390   : > { %v929_v35 = vld [vmem:[#allocation3] sm:$0xff]  ;;  %v930_v38 = vld [vmem:[#allocation3 + $0x8] sm:$0xff] }
 0x391   : > { %1453 = vmatpush3.bf16.msra.mxu0 %v929_v35  ;;  %v931_v40 = vld [vmem:[#allocation3 + $0x10] sm:$0xff]  ;;  %v932_v42 = vld [vmem:[#allocation3 + $0x18] sm:$0xff] }
 0x392   : > { %1454 = vmatprep.subr.bf16.mxu0 %v1896_v36 }
 0x395   : > { %1455 = vmatpush3.bf16.msra.mxu0 %v930_v38 }
 0x396   : > { %1456 = vmatprep.subr.bf16.mxu0 %v1896_v36 }
 0x399   : > { %1457 = vmatpush3.bf16.msra.mxu0 %v931_v40 }
 0x39a   : > { %1458 = vmatprep.subr.bf16.mxu0 %v1896_v36 }
 0x39d   : > { %1459 = vmatpush3.bf16.msra.mxu0 %v932_v42 }
 0x3a0   : > { %1461 = vmatmul.mubr.msk.bf16.vlgmr.msra.gmra.mrb[0].mxu0 %vm444_vm0, %v928_v44 }
 0x473   : > { %v970_v49 = vpop.f32.mrb[0].mxu0 }
 0x474   : > { %v976_v50 = vpack.c.bf16 %v970_v49, %v970_v49  ;;  %v1462_v51 = vpop.f32.mrb[1].mxu0 }
 0x475   : > { %v973_v52 = vpop.f32.mrb[2].mxu0 }
 0x476   : > { %v1463_v53 = vpop.f32.mrb[3].mxu0  ;;  %1481 = vmatmul.mubr.bf16.vlgmr.msra.gmra.mrb[0].mxu1 %v976_v50 }
 0x549   : > { %v1082_v56 = vpop.f32.mrb[0].mxu1 }
 0x54a   : > { %v1083_v57 = vadd.f32 %v1260_v55, %v1082_v56  ;;  %v1482_v58 = vpop.f32.mrb[1].mxu1 }
 0x54b   : > { %v1085_v59 = vpop.f32.mrb[2].mxu1 }
 0x54c   : > { %v1483_v60 = vpop.f32.mrb[3].mxu1  ;;  %v1091_v61 = vsel %vm1090_vm2, %v1083_v57, -1e+30 }
 0x54d   : > { %v1093_v63 = vsel %vm1092_vm3, %v1091_v61, -inf }
 0x54e   : > { %1094 = vmax.xlane.f32.xlu0 %v1093_v63 }
 0x5db   : > { %v1095_v1 = vpop.xlane.xlu0 %1094 }
 0x5dc   : > { %v1096_v2 = vsub.f32 %v1091_v61, %v1095_v1 }
 0x5de   : > { %v1097_v3 = vmul.f32 1.442695, %v1096_v2 }
 0x5e0   : > { %1653 = vpow2.f32 %v1097_v3 }
 0x5ea   : > { %v1654_v4 = vpop.eup %1653 }
 0x5eb   : > { %v1099_v30 = vsel %vm1092_vm3, %v1654_v4, 0.0 }
 0x5ec   : > { %1100 = vadd.xlane.f32.xlu0 %v1099_v30 }
 0x679   : > { %v1101_v0 = vpop.xlane.xlu0 %1100 }
 0x67a   : > { %1655 = vlog2.f32 %v1101_v0 }
 0x684   : > { %v1656_v62 = vpop.eup %1655 }
 0x685   : > { %v1103_v5 = vmul.f32 0.6931472, %v1656_v62 }
 0x687   : > { %v1104_v6 = vsub.f32 %v1096_v2, %v1103_v5 }
 0x689   : > { %1105 = vst [vmem:[#allocation15] sm:$0x3] %v1104_v6 }
 0x68a PF: > { %p1583_p10 = scmp.eq.s32.totalorder %s2051_s23, 1  ;;  %s1898_s15 = smov [#allocation15]  }
 0x68b   : > { %s1113_s22 = sshll.u32 %s1898_s15, 4  ;;  %s1114_s22 = int_to_ptr.vmem [resolvable:$true] %s1113_s22 }
 0x68c   : > { %s1795_s20 = scalar_lea.vmem %s1114_s22, 32  ;;  %p1802_p1 = scmp.lt.s32.totalorder %s1114_s22, %s1114_s22 }
 0x68d   : > { %p1796_p8 = scmp.ne.s32.totalorder %s1114_s22, %s1795_s20  ;;  %p1803_p4 = scmp.lt.s32.totalorder %s1795_s20, %s1795_s20 }
 0x68f   : > { %p1797_p0 = pnand %p1796_p8, %p1583_p10  ;;  %p1804_p9 = por %p1803_p4, %p1802_p1 }
 0x691   : > { %p1798_p5 = pneg %p1797_p0 }
 0x693   : > { %p1805_p6 = pnand %p1804_p9, %p1798_p5 }
 0x695   : > { %1808 = shalt.err (!%p1805_p6)
}
 0x696   : > { %s1809_s13 = scalar_lea.hbm %s2332_s8, 32 }
 0x697   : > { %p1810_p13 = scmp.ne.s32.totalorder %s2332_s8, %s1809_s13  ;;  %p1815_p2 = scmp.lt.u32.totalorder %s1809_s13, %s2332_s8 }
 0x699   : > { %p1811_p3 = pnand %p1810_p13, %p1583_p10 }
 0x69b   : > { %p1812_p7 = pneg %p1811_p3 }
 0x69d   : > { %p1817_p11 = pnand %p1815_p2, %p1812_p7 }
 0x69f   : > { %1820 = shalt.err (!%p1817_p11)
}
 0x6a0   : > { %1561 = dma.vmem_to_hbm [thread:$0]  (%p1583_p10), %s1114_s22, 32, %s2332_s8, [#allocation9]  }
 0x6a1   : > { %1860 = dma.done.wait (%p1583_p10), [#allocation9], 32  }
 0x6a2   : > { %1862 = vsyncadd (%p1583_p10), [#allocation9], 4294967264 }
 0x6a3 PF: > { %s2370_s29 = sld [smem:[#allocation27_spill]]  ;;  %s2371_s25 = sld [smem:[#allocation25_spill]] }
 0x6a4   : > { %s2373_s30 = sld [smem:[#allocation26_spill]]  ;;  %s2374_s9 = sld [smem:[#allocation28_spill]] }
 0x6a5   : > { %s2375_s27 = smov %s1869_s28 }
 0x6a9   : > { %s24_s10 = sadd.s32 1, %s2370_s29   ;;  %s2372_s29 = sld [smem:[#allocation29_spill]] }
 0x6aa   : > { %p21_p12 = scmp.ge.s32.totalorder %s24_s10, 4   ;;  %s2376_s28 = smov %s2371_s25 }
 0x6ac   :  { %23 = sbr.rel (!%p21_p12) target bundleno = 9 (0x9), region = 130 }
 0x6b3   :  { %1126 = vsyncpa [#allocation8], 1 }
 0x6b4   :  { %1128 = vsyncpa [#allocation8 + $0x1], 1 }
 0x6b5   :  { %1129 = vsyncpa [#allocation11], 1 }
 0x6b6   :  { %1131 = vsyncpa [#allocation11 + $0x1], 1 }
 0x6b7   :  { %1132 = vsyncpa [#allocation14], 1 }
 0x6b8   :  { %1133 = vsyncpa [#allocation9], 1 }
 0x6b9   :  { %1135 = vsyncpa [#allocation9 + $0x1], 1 }
 0x6ba   :  { %1136 = vsyncmov [#allocation6] }
 0x6bd   :  { %s1137_s23 = vpop.sfrf %1136 }
 0x6be   :  { %p1273_p10 = scmp.ne.s32.totalorder %s1137_s23, 0 }
 0x6c0   :  { %1141 = shalt.err (%p1273_p10)  }

</bundles_post_ra>
